<compile_context>
chip_gen: v6e
topology: v6e:2x2x1
jax: 0.10.0
libtpu: 0.0.40
codegen_flags: <defaults>
</compile_context>

<pallas_src>
import functools
import math

import jax
import jax.numpy as jnp
from jax.experimental import pallas as pl
from jax.experimental.pallas import tpu as pltpu


def _round_up(v: int, m: int) -> int:
    return ((v + m - 1) // m) * m


def _drop_path_kernel(x_ref, m_ref, o_ref):
    """One (TM, TF) tile: out = x * per-row mask; mask values are {0, scale} in x.dtype."""
    o_ref[...] = x_ref[...] * m_ref[...]        # (TM, TF) * (TM, 1) lane-broadcast


def drop_path_tpu(x, drop_prob=0.0, *, training=False, scale_by_keep=True, key=None):
    """Pallas-TPU DropPath forward.

    drop_prob / training / scale_by_keep are static Python values.  `key` is a jax PRNG key;
    pass a fresh key per forward call to match torch's fresh bernoulli_ draw.
    """
    if drop_prob == 0.0 or not training:
        return x                                # PyTorch eval / p==0 path: identity, zero cost

    if key is None:
        key = jax.random.PRNGKey(0)

    keep_prob = 1.0 - float(drop_prob)
    scale = (1.0 / keep_prob) if (scale_by_keep and keep_prob > 0.0) else 1.0

    orig_shape = x.shape
    n = orig_shape[0]
    f = int(math.prod(orig_shape[1:]))
    itemsize = jnp.dtype(x.dtype).itemsize

    # Per-sample mask, drawn once per call (tiny: N values), stored in x.dtype like PyTorch.
    keep = jax.random.bernoulli(key, p=keep_prob, shape=(n, 1))
    mask2 = jnp.where(keep, jnp.asarray(scale, dtype=x.dtype),
                      jnp.asarray(0.0, dtype=x.dtype))

    # Lane-dense slab, padded to (multiple of 8, multiple of 128) so blocks obey the (8,128)
    # constraint and stores stay unmasked.  Padded rows get mask 0 and are sliced off.
    x2 = x.reshape(n, f)
    n_pad = _round_up(n, 8)
    f_pad = _round_up(f, 128)
    if n_pad != n or f_pad != f:
        x2 = jnp.pad(x2, ((0, n_pad - n), (0, f_pad - f)))
    if n_pad != n:
        mask2 = jnp.pad(mask2, ((0, n_pad - n), (0, 0)))

    # Block sizing: ~4 MiB per block (double-buffered in+out => ~16 MiB peak, << 48 MiB limit).
    target_block_bytes = 4 << 20
    tm = min(n_pad, 256)
    tf_cap = max(128, (target_block_bytes // (tm * itemsize)) // 128 * 128)
    tf = min(f_pad, tf_cap)

    grid_m = pl.cdiv(n_pad, tm)
    grid_f = pl.cdiv(f_pad, tf)
    # v7x has 2 TensorCores: avoid a degenerate (1,1) grid when we can split the feature axis
    # cleanly into two 128-aligned halves.
    if grid_m == 1 and grid_f == 1 and f_pad % 256 == 0:
        tf = f_pad // 2
        grid_f = 2

    out2 = pl.pallas_call(
        _drop_path_kernel,
        out_shape=jax.ShapeDtypeStruct((n_pad, f_pad), x.dtype),
        grid=(grid_m, grid_f),
        in_specs=[
            pl.BlockSpec((tm, tf), lambda i, j: (i, j)),   # x tile
            pl.BlockSpec((tm, 1), lambda i, j: (i, 0)),    # per-row mask (row tile only)
        ],
        out_specs=pl.BlockSpec((tm, tf), lambda i, j: (i, j)),
        compiler_params=pltpu.CompilerParams(
            dimension_semantics=("parallel", "parallel"),
            vmem_limit_bytes=48 * 1024 * 1024,
        ),
        cost_estimate=pl.CostEstimate(
            flops=n_pad * f_pad,
            bytes_accessed=2 * n_pad * f_pad * itemsize + n_pad * itemsize,
            transcendentals=0,
        ),
    )(x2, mask2)

    if n_pad != n or f_pad != f:
        out2 = out2[:n, :f]
    return out2.reshape(orig_shape)


if __name__ == "__main__":
    key = jax.random.PRNGKey(0)
    kx, kmask = jax.random.split(key)
    x = jax.random.normal(kx, (2, 4, 16, 16), dtype=jnp.float32)   # NCHW like the PyTorch module

    drop_prob = 0.25
    keep_prob = 1.0 - drop_prob

    # eval-mode / p==0 paths: identity, exactly like PyTorch
    y_eval = drop_path_tpu(x, drop_prob, training=False, key=kmask)
    assert y_eval.shape == x.shape and bool(jnp.all(y_eval == x))
    y_p0 = drop_path_tpu(x, 0.0, training=True, key=kmask)
    assert bool(jnp.all(y_p0 == x))

    # training-mode path (runs the Pallas kernel)
    fwd = jax.jit(functools.partial(drop_path_tpu, drop_prob=drop_prob,
                                    training=True, scale_by_keep=True))
    y = jax.block_until_ready(fwd(x, key=kmask))

    assert y.shape == x.shape
    assert bool(jnp.all(jnp.isfinite(y)))

    # Per-sample semantics check: each batch element is either entirely zeroed
    # or equals x / keep_prob (scale_by_keep=True).
    yf = y.reshape(y.shape[0], -1)
    xf = x.reshape(x.shape[0], -1)
    for b in range(x.shape[0]):
        kept = bool(jnp.allclose(yf[b], xf[b] / keep_prob, rtol=1e-5, atol=1e-5))
        dropped = bool(jnp.allclose(yf[b], 0.0, atol=0.0))
        assert kept or dropped, f"sample {b}: neither kept-and-scaled nor dropped"

    print("KERNEL_OK")
</pallas_src>

<mosaic_0001>
module attributes {stable_mosaic.version = 11 : i64} {
  func.func @_drop_path_kernel(%arg0: i32, %arg1: i32, %arg2: memref<8x512xf32, #tpu.memory_space<vmem>>, %arg3: memref<8x1xf32, #tpu.memory_space<vmem>>, %arg4: memref<8x512xf32, #tpu.memory_space<vmem>>) attributes {dimension_semantics = [#tpu.dimension_semantics<parallel>, #tpu.dimension_semantics<parallel>], iteration_bounds = array<i64: 1, 2>, scalar_prefetch = 0 : i64, scratch_operands = 0 : i64, tpu.core_type = #tpu.core_type<tc>, window_params = [{transform_indices = @transform_0, window_bounds = array<i64: 8, 512>}, {transform_indices = @transform_1, window_bounds = array<i64: 8, 1>}, {transform_indices = @transform_2, window_bounds = array<i64: 8, 512>}]} {
    %c0 = arith.constant 0 : index
    %c0_0 = arith.constant 0 : index
    %0 = vector.load %arg2[%c0, %c0_0] : memref<8x512xf32, #tpu.memory_space<vmem>>, vector<8x512xf32>
    %c0_1 = arith.constant 0 : index
    %c0_2 = arith.constant 0 : index
    %1 = vector.load %arg3[%c0_1, %c0_2] : memref<8x1xf32, #tpu.memory_space<vmem>>, vector<8x1xf32>
    %2 = vector.broadcast %1 : vector<8x1xf32> to vector<8x512xf32>
    %3 = arith.mulf %0, %2 : vector<8x512xf32>
    %c0_3 = arith.constant 0 : index
    %c0_4 = arith.constant 0 : index
    %4 = vector.load %arg4[%c0_3, %c0_4] : memref<8x512xf32, #tpu.memory_space<vmem>>, vector<8x512xf32>
    tpu.vector_store %arg4[%c0_3, %c0_4], %3 {strides = array<i32>} : memref<8x512xf32, #tpu.memory_space<vmem>>, vector<8x512xf32>,
    return
  }
  func.func @transform_0(%arg0: i32, %arg1: i32) -> (i32, i32) {
    %c0_i32 = arith.constant 0 : i32
    return %arg0, %arg1 : i32, i32
  }
  func.func @transform_1(%arg0: i32, %arg1: i32) -> (i32, i32) {
    %c0_i32 = arith.constant 0 : i32
    %c0_i32_0 = arith.constant 0 : i32
    return %arg0, %c0_i32 : i32, i32
  }
  func.func @transform_2(%arg0: i32, %arg1: i32) -> (i32, i32) {
    %c0_i32 = arith.constant 0 : i32
    return %arg0, %arg1 : i32, i32
  }
}

</mosaic_0001>

<bundles_post_ra>
// kernel: drop_path_tpu.1
= control target key start
LH: loop header
LB: loop body
LE: loop exit
PB: predicated region body
PF: predicated region fallthrough
CT: control target
= control target key end

     0   :  { %s398_s9 = smov 0   ;;  %s400_s10 = smov 0   ;;  %s434_s0 = inlined_call_operand.vmem [shape: f32[8,1024], index: 0, kind: input, shape index: {}]   ;;  %s435_s1 = inlined_call_operand.vmem [shape: f32[8,1], index: 1, kind: input, shape index: {}]   ;;  %s436_s2 = inlined_call_operand.vmem [shape: f32[8,1024], index: 2, kind: output, shape index: {}]  }
   0x1   :  { %s402_s11 = smov 0  }
   0x2 LB: > { %s21_s12 = sadd.s32 1, %s376_s10  ;;  %p325_p0 = scmp.ge.s32.totalorder %s380_s11, 1  ;;  %s380_s11 = sphi %s402_s11, %s12_s11   ;;  %s376_s10 = sphi %s400_s10, %s438_s10   ;;  %s372_s9 = sphi %s398_s9, %s437_s9  }
   0x3   : > { %p22_p1 = scmp.ge.s32.totalorder %s21_s12, 2  ;;  %p142_p2 = scmp.lt.s32.totalorder %s380_s11, 3 }
   0x5   : > { %s440_s12 = smov (%p22_p1, %s21_s12), 0  ;;  %p143_p3 = pnand %p325_p0, %p142_p2 }
   0x6   : > { %s326_s15 = sshll.u32 (!%p143_p3), %s372_s9, 2 }
   0x7   : > { %146 = sbr.rel (%p143_p3) target bundleno = 142 (0x8e), region = 28  ;;  %p179_p4 = scmp.lt.s32.totalorder (!%p143_p3), %s326_s15, 7 }
   0xc   : > { %v204_v0 = vld [vmem:[%s435_s1] sm:$0xff]  ;;  %v382_v1 = vmov 0   ;;  %s442_s15 = smov (!%p179_p4, %s326_s15), 7 }
   0xd   : > { %357 = vset.pattern.permute.xlu0 %v382_v1  ;;  %s327_s16 = sshll.u32 %s442_s15, 3 }
   0xe   : > { %207 = vperm.xlu0 %357, %v204_v0   ;;  %s184_s19 = scalar_lea.vmem %s434_s0, %s327_s16  ;;  %s198_s22 = scalar_lea.vmem %s436_s2, %s327_s16 }
   0xf   : > { %v200_v2 = vld [vmem:[%s184_s19] sm:$0xff]  ;;  %v201_v3 = vld [vmem:[%s184_s19 + $0x8] sm:$0xff]  ;;  %v202_v5 = vld [vmem:[%s184_s19 + $0x10] sm:$0xff] }
  0x10   : > { %v203_v6 = vld [vmem:[%s184_s19 + $0x18] sm:$0xff] }
  0x89   : > { %v208_v4 = vpop.permute.xlu0 %207 }
  0x8a   : > { %v210_v7 = vmul.f32 %v208_v4, %v200_v2  ;;  %v211_v8 = vmul.f32 %v208_v4, %v201_v3  ;;  %v212_v9 = vmul.f32 %v208_v4, %v202_v5  ;;  %v213_v10 = vmul.f32 %v208_v4, %v203_v6 }
  0x8c   : > { %214 = vst [vmem:[%s198_s22] sm:$0xff] %v210_v7  ;;  %215 = vst [vmem:[%s198_s22 + $0x8] sm:$0xff] %v211_v8 }
  0x8d   : > { %216 = vst [vmem:[%s198_s22 + $0x10] sm:$0xff] %v212_v9  ;;  %217 = vst [vmem:[%s198_s22 + $0x18] sm:$0xff] %v213_v10 }
  0x8e PF: > { %s12_s11 = sadd.s32 1, %s380_s11   ;;  %s437_s9 = smov %s376_s10 }
  0x8f   : > { %p9_p5 = scmp.ge.s32.totalorder %s12_s11, 4   ;;  %s438_s10 = smov %s440_s12 }
  0x91   :  { %11 = sbr.rel (!%p9_p5) target bundleno = 2 (0x2), region = 61 }

</bundles_post_ra>
